<compile_context>
chip_gen: v5e
topology: v5e:2x2
jax: 0.10.0
libtpu: 0.0.40
codegen_flags: <defaults>
</compile_context>

<pallas_src>
import jax
import jax.numpy as jnp
from jax.experimental import pallas as pl
from jax.experimental.pallas import tpu as pltpu


def _rnn_kernel(x_ref, wih_ref, whh_ref, b_ref, h0_ref, h_out_ref, xp_scr):
    T, B, d_in = x_ref.shape
    H = whh_ref.shape[1]

    # ---- Hoisted input projection: one (T*B, d_in) x (d_in, H) matmul -------
    # Merging (T, B) -> T*B is layout-free (B is a multiple of 8).
    x2 = x_ref[...].reshape(T * B, d_in)
    xp = jnp.dot(x2, wih_ref[...], preferred_element_type=jnp.float32) + b_ref[...]
    xp_scr[...] = xp                                   # (T*B, H) in VMEM

    # Loop-invariant recurrent weight: load once, keep live across the loop.
    whh = whh_ref[...]                                 # (H, H)

    # ---- Serial recurrence: matmul + tanh only, fully unrolled --------------
    def step(t, h):
        row = pl.multiple_of(t * B, 8)                 # aligned sublane start
        x_t = xp_scr[pl.ds(row, B), :]                 # (B, H), bias already in
        pre = x_t + jnp.dot(h, whh, preferred_element_type=jnp.float32)
        return jnp.tanh(pre)

    h_final = jax.lax.fori_loop(0, T, step, h0_ref[...], unroll=True)
    h_out_ref[...] = h_final                           # single lane-dense store


def rnn_forward(input_seq, hidden, params, batch_size):
    """Mirror of RNN.forward (eval mode).

    input_seq: (valid, T, D_in) f32, batch_first (PyTorch convention)
    hidden:    (1, batch_size, H) f32
    returns (predictions (valid,), hidden (1, batch_size, H))
    """
    w_ih, w_hh, b_ih, b_hh, w_lin, b_lin = params
    valid, T, d_in = input_seq.shape
    H = w_hh.shape[0]
    n_rows = max(batch_size, hidden.shape[1], valid)
    B = ((n_rows + 7) // 8) * 8                        # pad batch to sublane multiple

    # Pad batch + go time-major in one fused scatter (the padded copy is needed
    # anyway to mirror the torch.zeros() padding path; no extra HBM round trip).
    x_tm = jnp.zeros((T, B, d_in), jnp.float32)
    x_tm = x_tm.at[:, :valid, :].set(
        jnp.swapaxes(input_seq.astype(jnp.float32), 0, 1))

    h0 = jnp.zeros((B, H), jnp.float32).at[:hidden.shape[1]].set(hidden[0])

    wih_t = w_ih.T                                     # (D_in, H)
    whh_t = w_hh.T                                     # (H, H)
    b_sum = (b_ih + b_hh).reshape(1, H)                # fused bias (applies to
                                                       # zero-padded rows too,
                                                       # matching nn.RNN)

    hidden_out = pl.pallas_call(
        _rnn_kernel,
        out_shape=jax.ShapeDtypeStruct((B, H), jnp.float32),
        grid_spec=pltpu.PrefetchScalarGridSpec(
            num_scalar_prefetch=0,
            grid=(1,),                                 # single step: recurrence
            in_specs=[                                 # lives inside the kernel
                pl.BlockSpec((T, B, d_in), lambda i: (0, 0, 0)),   # x (time-major)
                pl.BlockSpec((d_in, H),    lambda i: (0, 0)),      # W_ih^T
                pl.BlockSpec((H, H),       lambda i: (0, 0)),      # W_hh^T
                pl.BlockSpec((1, H),       lambda i: (0, 0)),      # b_ih+b_hh
                pl.BlockSpec((B, H),       lambda i: (0, 0)),      # h0
            ],
            out_specs=pl.BlockSpec((B, H), lambda i: (0, 0)),      # h_T
            scratch_shapes=[pltpu.VMEM((T * B, H), jnp.float32)],  # x@W_ih^T + b
        ),
        compiler_params=pltpu.CompilerParams(
            dimension_semantics=("arbitrary",)),
    )(x_tm, wih_t, whh_t, b_sum, h0)

    # Classifier head + sigmoid in the wrapper (keeps kernel output lane-dense).
    logits = hidden_out[:valid] @ w_lin.T + b_lin      # (valid, cls_num)
    predictions = jax.nn.sigmoid(logits)[:, 0]         # == sigmoid(lin(out))[:, -1, 0]
    new_hidden = hidden_out[:hidden.shape[1]][None]    # (1, batch_size, H)
    return predictions, new_hidden


def _reference(input_seq, hidden, params, batch_size):
    """Pure-JAX reference of the same forward pass."""
    w_ih, w_hh, b_ih, b_hh, w_lin, b_lin = params
    valid = input_seq.shape[0]
    T, d_in = input_seq.shape[1], input_seq.shape[2]
    if valid != hidden.shape[1]:
        x = jnp.zeros((batch_size, T, d_in), jnp.float32).at[:valid].set(input_seq)
    else:
        x = input_seq
    h = hidden[0]
    for t in range(T):
        h = jnp.tanh(x[:, t] @ w_ih.T + b_ih + h @ w_hh.T + b_hh)
    logits = h @ w_lin.T + b_lin
    return jax.nn.sigmoid(logits)[:valid, 0], h[None]


if __name__ == "__main__":
    # small shapes consistent with the module (input_dim, hidden_dim shrunk)
    batch_size, seq_len, input_dim, hidden_dim, cls_num = 2, 8, 128, 128, 1

    key = jax.random.PRNGKey(0)
    ks = jax.random.split(key, 8)
    scale_ih = 1.0 / jnp.sqrt(hidden_dim)
    params = (
        jax.random.uniform(ks[0], (hidden_dim, input_dim), jnp.float32,
                           -scale_ih, scale_ih),                      # weight_ih_l0
        jax.random.uniform(ks[1], (hidden_dim, hidden_dim), jnp.float32,
                           -scale_ih, scale_ih),                      # weight_hh_l0
        jax.random.uniform(ks[2], (hidden_dim,), jnp.float32,
                           -scale_ih, scale_ih),                      # bias_ih_l0
        jax.random.uniform(ks[3], (hidden_dim,), jnp.float32,
                           -scale_ih, scale_ih),                      # bias_hh_l0
        jax.random.uniform(ks[4], (cls_num, hidden_dim), jnp.float32,
                           -scale_ih, scale_ih),                      # linear.weight
        jax.random.uniform(ks[5], (cls_num,), jnp.float32,
                           -scale_ih, scale_ih),                      # linear.bias
    )

    input_seq = jax.random.normal(ks[6], (batch_size, seq_len, input_dim), jnp.float32)
    hidden0 = jnp.zeros((1, batch_size, hidden_dim), jnp.float32)     # init_hidden()

    preds, hidden_out = rnn_forward(input_seq, hidden0, params, batch_size)
    preds = jax.block_until_ready(preds)
    hidden_out = jax.block_until_ready(hidden_out)

    ref_preds, ref_hidden = _reference(input_seq, hidden0, params, batch_size)
    assert preds.shape == (batch_size,)
    assert hidden_out.shape == (1, batch_size, hidden_dim)
    assert jnp.allclose(preds, ref_preds, atol=1e-4, rtol=1e-4)
    assert jnp.allclose(hidden_out, ref_hidden, atol=1e-4, rtol=1e-4)

    print("KERNEL_OK")
</pallas_src>

<mosaic_0001>
module attributes {stable_mosaic.version = 11 : i64} {
  func.func @_rnn_kernel(%arg0: i32, %arg1: memref<8x8x128xf32, #tpu.memory_space<vmem>>, %arg2: memref<128x128xf32, #tpu.memory_space<vmem>>, %arg3: memref<128x128xf32, #tpu.memory_space<vmem>>, %arg4: memref<1x128xf32, #tpu.memory_space<vmem>>, %arg5: memref<8x128xf32, #tpu.memory_space<vmem>>, %arg6: memref<8x128xf32, #tpu.memory_space<vmem>>, %arg7: memref<64x128xf32, #tpu.memory_space<vmem>>) attributes {dimension_semantics = [#tpu.dimension_semantics<arbitrary>], iteration_bounds = array<i64: 1>, scalar_prefetch = 0 : i64, scratch_operands = 1 : i64, tpu.core_type = #tpu.core_type<tc>, window_params = [{pipeline_mode = #tpu.pipeline_mode<synchronous>, transform_indices = @transform_0, window_bounds = array<i64: 8, 8, 128>}, {pipeline_mode = #tpu.pipeline_mode<synchronous>, transform_indices = @transform_1, window_bounds = array<i64: 128, 128>}, {pipeline_mode = #tpu.pipeline_mode<synchronous>, transform_indices = @transform_2, window_bounds = array<i64: 128, 128>}, {pipeline_mode = #tpu.pipeline_mode<synchronous>, transform_indices = @transform_3, window_bounds = array<i64: 1, 128>}, {pipeline_mode = #tpu.pipeline_mode<synchronous>, transform_indices = @transform_4, window_bounds = array<i64: 8, 128>}, {pipeline_mode = #tpu.pipeline_mode<synchronous>, transform_indices = @transform_5, window_bounds = array<i64: 8, 128>}]} {
    %c0 = arith.constant 0 : index
    %c0_0 = arith.constant 0 : index
    %c0_1 = arith.constant 0 : index
    %0 = vector.load %arg1[%c0, %c0_0, %c0_1] : memref<8x8x128xf32, #tpu.memory_space<vmem>>, vector<8x8x128xf32>
    %1 = vector.shape_cast %0 : vector<8x8x128xf32> to vector<64x128xf32>
    %c0_2 = arith.constant 0 : index
    %c0_3 = arith.constant 0 : index
    %2 = vector.load %arg2[%c0_2, %c0_3] : memref<128x128xf32, #tpu.memory_space<vmem>>, vector<128x128xf32>
    %cst = arith.constant dense<0.000000e+00> : vector<64x128xf32>
    %3 = tpu.matmul %1, %2, %cst {dimension_numbers = #tpu.dot_dimension_numbers<[1], [0], [0], [1], [0, 0, 1, 1], [], []>} : vector<64x128xf32>, vector<128x128xf32>, vector<64x128xf32> -> vector<64x128xf32>
    %c0_4 = arith.constant 0 : index
    %c0_5 = arith.constant 0 : index
    %4 = vector.load %arg4[%c0_4, %c0_5] : memref<1x128xf32, #tpu.memory_space<vmem>>, vector<1x128xf32>
    %5 = vector.broadcast %4 : vector<1x128xf32> to vector<64x128xf32>
    %6 = arith.addf %3, %5 : vector<64x128xf32>
    %c0_6 = arith.constant 0 : index
    %c0_7 = arith.constant 0 : index
    %7 = vector.load %arg7[%c0_6, %c0_7] : memref<64x128xf32, #tpu.memory_space<vmem>>, vector<64x128xf32>
    tpu.vector_store %arg7[%c0_6, %c0_7], %6 {strides = array<i32>} : memref<64x128xf32, #tpu.memory_space<vmem>>, vector<64x128xf32>,
    %c0_8 = arith.constant 0 : index
    %c0_9 = arith.constant 0 : index
    %8 = vector.load %arg3[%c0_8, %c0_9] : memref<128x128xf32, #tpu.memory_space<vmem>>, vector<128x128xf32>
    %c0_10 = arith.constant 0 : index
    %c0_11 = arith.constant 0 : index
    %9 = vector.load %arg5[%c0_10, %c0_11] : memref<8x128xf32, #tpu.memory_space<vmem>>, vector<8x128xf32>
    %c0_i32 = arith.constant 0 : i32
    %c8_i32 = arith.constant 8 : i32
    %10 = arith.muli %c0_i32, %c8_i32 : i32
    %11 = tpu.assume_multiple %10, 8 : i32
    %12 = arith.index_cast %11 : i32 to index
    %c0_12 = arith.constant 0 : index
    %13 = vector.load %arg7[%12, %c0_12] : memref<64x128xf32, #tpu.memory_space<vmem>>, vector<8x128xf32>
    %cst_13 = arith.constant dense<0.000000e+00> : vector<8x128xf32>
    %14 = tpu.matmul %9, %8, %cst_13 {dimension_numbers = #tpu.dot_dimension_numbers<[1], [0], [0], [1], [0, 0, 1, 1], [], []>} : vector<8x128xf32>, vector<128x128xf32>, vector<8x128xf32> -> vector<8x128xf32>
    %15 = arith.addf %13, %14 : vector<8x128xf32>
    %16 = math.tanh %15 : vector<8x128xf32>
    %c1_i32 = arith.constant 1 : i32
    %c8_i32_14 = arith.constant 8 : i32
    %17 = arith.muli %c1_i32, %c8_i32_14 : i32
    %18 = tpu.assume_multiple %17, 8 : i32
    %19 = arith.index_cast %18 : i32 to index
    %c0_15 = arith.constant 0 : index
    %20 = vector.load %arg7[%19, %c0_15] : memref<64x128xf32, #tpu.memory_space<vmem>>, vector<8x128xf32>
    %cst_16 = arith.constant dense<0.000000e+00> : vector<8x128xf32>
    %21 = tpu.matmul %16, %8, %cst_16 {dimension_numbers = #tpu.dot_dimension_numbers<[1], [0], [0], [1], [0, 0, 1, 1], [], []>} : vector<8x128xf32>, vector<128x128xf32>, vector<8x128xf32> -> vector<8x128xf32>
    %22 = arith.addf %20, %21 : vector<8x128xf32>
    %23 = math.tanh %22 : vector<8x128xf32>
    %c2_i32 = arith.constant 2 : i32
    %c8_i32_17 = arith.constant 8 : i32
    %24 = arith.muli %c2_i32, %c8_i32_17 : i32
    %25 = tpu.assume_multiple %24, 8 : i32
    %26 = arith.index_cast %25 : i32 to index
    %c0_18 = arith.constant 0 : index
    %27 = vector.load %arg7[%26, %c0_18] : memref<64x128xf32, #tpu.memory_space<vmem>>, vector<8x128xf32>
    %cst_19 = arith.constant dense<0.000000e+00> : vector<8x128xf32>
    %28 = tpu.matmul %23, %8, %cst_19 {dimension_numbers = #tpu.dot_dimension_numbers<[1], [0], [0], [1], [0, 0, 1, 1], [], []>} : vector<8x128xf32>, vector<128x128xf32>, vector<8x128xf32> -> vector<8x128xf32>
    %29 = arith.addf %27, %28 : vector<8x128xf32>
    %30 = math.tanh %29 : vector<8x128xf32>
    %c3_i32 = arith.constant 3 : i32
    %c8_i32_20 = arith.constant 8 : i32
    %31 = arith.muli %c3_i32, %c8_i32_20 : i32
    %32 = tpu.assume_multiple %31, 8 : i32
    %33 = arith.index_cast %32 : i32 to index
    %c0_21 = arith.constant 0 : index
    %34 = vector.load %arg7[%33, %c0_21] : memref<64x128xf32, #tpu.memory_space<vmem>>, vector<8x128xf32>
    %cst_22 = arith.constant dense<0.000000e+00> : vector<8x128xf32>
    %35 = tpu.matmul %30, %8, %cst_22 {dimension_numbers = #tpu.dot_dimension_numbers<[1], [0], [0], [1], [0, 0, 1, 1], [], []>} : vector<8x128xf32>, vector<128x128xf32>, vector<8x128xf32> -> vector<8x128xf32>
    %36 = arith.addf %34, %35 : vector<8x128xf32>
    %37 = math.tanh %36 : vector<8x128xf32>
    %c4_i32 = arith.constant 4 : i32
    %c8_i32_23 = arith.constant 8 : i32
    %38 = arith.muli %c4_i32, %c8_i32_23 : i32
    %39 = tpu.assume_multiple %38, 8 : i32
    %40 = arith.index_cast %39 : i32 to index
    %c0_24 = arith.constant 0 : index
    %41 = vector.load %arg7[%40, %c0_24] : memref<64x128xf32, #tpu.memory_space<vmem>>, vector<8x128xf32>
    %cst_25 = arith.constant dense<0.000000e+00> : vector<8x128xf32>
    %42 = tpu.matmul %37, %8, %cst_25 {dimension_numbers = #tpu.dot_dimension_numbers<[1], [0], [0], [1], [0, 0, 1, 1], [], []>} : vector<8x128xf32>, vector<128x128xf32>, vector<8x128xf32> -> vector<8x128xf32>
    %43 = arith.addf %41, %42 : vector<8x128xf32>
    %44 = math.tanh %43 : vector<8x128xf32>
    %c5_i32 = arith.constant 5 : i32
    %c8_i32_26 = arith.constant 8 : i32
    %45 = arith.muli %c5_i32, %c8_i32_26 : i32
    %46 = tpu.assume_multiple %45, 8 : i32
    %47 = arith.index_cast %46 : i32 to index
    %c0_27 = arith.constant 0 : index
    %48 = vector.load %arg7[%47, %c0_27] : memref<64x128xf32, #tpu.memory_space<vmem>>, vector<8x128xf32>
    %cst_28 = arith.constant dense<0.000000e+00> : vector<8x128xf32>
    %49 = tpu.matmul %44, %8, %cst_28 {dimension_numbers = #tpu.dot_dimension_numbers<[1], [0], [0], [1], [0, 0, 1, 1], [], []>} : vector<8x128xf32>, vector<128x128xf32>, vector<8x128xf32> -> vector<8x128xf32>
    %50 = arith.addf %48, %49 : vector<8x128xf32>
    %51 = math.tanh %50 : vector<8x128xf32>
    %c6_i32 = arith.constant 6 : i32
    %c8_i32_29 = arith.constant 8 : i32
    %52 = arith.muli %c6_i32, %c8_i32_29 : i32
    %53 = tpu.assume_multiple %52, 8 : i32
    %54 = arith.index_cast %53 : i32 to index
    %c0_30 = arith.constant 0 : index
    %55 = vector.load %arg7[%54, %c0_30] : memref<64x128xf32, #tpu.memory_space<vmem>>, vector<8x128xf32>
    %cst_31 = arith.constant dense<0.000000e+00> : vector<8x128xf32>
    %56 = tpu.matmul %51, %8, %cst_31 {dimension_numbers = #tpu.dot_dimension_numbers<[1], [0], [0], [1], [0, 0, 1, 1], [], []>} : vector<8x128xf32>, vector<128x128xf32>, vector<8x128xf32> -> vector<8x128xf32>
    %57 = arith.addf %55, %56 : vector<8x128xf32>
    %58 = math.tanh %57 : vector<8x128xf32>
    %c7_i32 = arith.constant 7 : i32
    %c8_i32_32 = arith.constant 8 : i32
    %59 = arith.muli %c7_i32, %c8_i32_32 : i32
    %60 = tpu.assume_multiple %59, 8 : i32
    %61 = arith.index_cast %60 : i32 to index
    %c0_33 = arith.constant 0 : index
    %62 = vector.load %arg7[%61, %c0_33] : memref<64x128xf32, #tpu.memory_space<vmem>>, vector<8x128xf32>
    %cst_34 = arith.constant dense<0.000000e+00> : vector<8x128xf32>
    %63 = tpu.matmul %58, %8, %cst_34 {dimension_numbers = #tpu.dot_dimension_numbers<[1], [0], [0], [1], [0, 0, 1, 1], [], []>} : vector<8x128xf32>, vector<128x128xf32>, vector<8x128xf32> -> vector<8x128xf32>
    %64 = arith.addf %62, %63 : vector<8x128xf32>
    %65 = math.tanh %64 : vector<8x128xf32>
    %c8_i32_35 = arith.constant 8 : i32
    %c0_36 = arith.constant 0 : index
    %c0_37 = arith.constant 0 : index
    %66 = vector.load %arg6[%c0_36, %c0_37] : memref<8x128xf32, #tpu.memory_space<vmem>>, vector<8x128xf32>
    tpu.vector_store %arg6[%c0_36, %c0_37], %65 {strides = array<i32>} : memref<8x128xf32, #tpu.memory_space<vmem>>, vector<8x128xf32>,
    return
  }
  func.func @transform_0(%arg0: i32) -> (i32, i32, i32) {
    %c0_i32 = arith.constant 0 : i32
    %c0_i32_0 = arith.constant 0 : i32
    %c0_i32_1 = arith.constant 0 : i32
    %c0_i32_2 = arith.constant 0 : i32
    return %c0_i32, %c0_i32_0, %c0_i32_1 : i32, i32, i32
  }
  func.func @transform_1(%arg0: i32) -> (i32, i32) {
    %c0_i32 = arith.constant 0 : i32
    %c0_i32_0 = arith.constant 0 : i32
    %c0_i32_1 = arith.constant 0 : i32
    return %c0_i32, %c0_i32_0 : i32, i32
  }
  func.func @transform_2(%arg0: i32) -> (i32, i32) {
    %c0_i32 = arith.constant 0 : i32
    %c0_i32_0 = arith.constant 0 : i32
    %c0_i32_1 = arith.constant 0 : i32
    return %c0_i32, %c0_i32_0 : i32, i32
  }
  func.func @transform_3(%arg0: i32) -> (i32, i32) {
    %c0_i32 = arith.constant 0 : i32
    %c0_i32_0 = arith.constant 0 : i32
    %c0_i32_1 = arith.constant 0 : i32
    return %c0_i32, %c0_i32_0 : i32, i32
  }
  func.func @transform_4(%arg0: i32) -> (i32, i32) {
    %c0_i32 = arith.constant 0 : i32
    %c0_i32_0 = arith.constant 0 : i32
    %c0_i32_1 = arith.constant 0 : i32
    return %c0_i32, %c0_i32_0 : i32, i32
  }
  func.func @transform_5(%arg0: i32) -> (i32, i32) {
    %c0_i32 = arith.constant 0 : i32
    %c0_i32_0 = arith.constant 0 : i32
    %c0_i32_1 = arith.constant 0 : i32
    return %c0_i32, %c0_i32_0 : i32, i32
  }
}

</mosaic_0001>

<bundles_post_ra>
// kernel: tpu_custom_call.1
= control target key start
LH: loop header
LB: loop body
LE: loop exit
PB: predicated region body
PF: predicated region fallthrough
CT: control target
= control target key end

     0   :  { %10 = vsyncpa [#allocation4], 0  ;;  %s764_s0 = inlined_call_operand.hbm [shape: f32[8,8,128], index: 0, kind: input, shape index: {}]   ;;  %s765_s1 = inlined_call_operand.hbm [shape: f32[128,128], index: 1, kind: input, shape index: {}]   ;;  %s766_s2 = inlined_call_operand.hbm [shape: f32[128,128], index: 2, kind: input, shape index: {}]   ;;  %s767_s3 = inlined_call_operand.vmem [shape: f32[1,128], index: 3, kind: input, shape index: {}]   ;;  %s768_s4 = inlined_call_operand.hbm [shape: f32[8,128], index: 4, kind: input, shape index: {}]   ;;  %s769_s5 = inlined_call_operand.hbm [shape: f32[8,128], index: 5, kind: output, shape index: {}]  }
   0x1   :  { %11 = vsyncpa [#allocation7], 0 }
   0x2   :  { %12 = vsyncpa [#allocation10], 0 }
   0x3   :  { %13 = vsyncpa [#allocation5], 0  ;;  %s31_s20 = sshll.u32 %s765_s1, 4  ;;  %s539_s21 = smov [#allocation6]   ;;  %s32_s20 = int_to_ptr.hbm [resolvable:$true] %s31_s20 }
   0x4   :  { %s33_s22 = sshll.u32 %s539_s21, 4  ;;  %s18_s25 = sshll.u32 %s764_s0, 4  ;;  %s34_s22 = int_to_ptr.vmem [resolvable:$true] %s33_s22  ;;  %s19_s25 = int_to_ptr.hbm [resolvable:$true] %s18_s25 }
   0x5   :  { %s540_s26 = smov 128   ;;  %s541_s27 = smov 8  }
   0x6   :  { %39 = dma.hbm_to_vmem [thread:$0]  %s32_s20, 2048, %s34_s22, [#allocation7], %s540_s26, %s540_s26, %s541_s27  }
   0x7   :  { %s542_s28 = smov [#allocation3]   ;;  %s44_s7 = sshll.u32 %s766_s2, 4  ;;  %s45_s7 = int_to_ptr.hbm [resolvable:$true] %s44_s7 }
   0x8   :  { %s20_s29 = sshll.u32 %s542_s28, 4  ;;  %s60_s9 = sshll.u32 %s768_s4, 4  ;;  %s21_s29 = int_to_ptr.vmem [resolvable:$true] %s20_s29  ;;  %s61_s9 = int_to_ptr.hbm [resolvable:$true] %s60_s9 }
   0x9   :  { %26 = dma.hbm_to_vmem [thread:$0]  %s19_s25, 1024, %s21_s29, [#allocation4], %s540_s26, %s540_s26, %s541_s27  }
   0xa   :  { %s543_s10 = smov [#allocation8]   ;;  %s544_s0 = smov [#allocation9]  }
   0xb   :  { %s46_s11 = sshll.u32 %s543_s10, 4  ;;  %s62_s12 = sshll.u32 %s544_s0, 4  ;;  %s47_s11 = int_to_ptr.vmem [resolvable:$true] %s46_s11  ;;  %s63_s12 = int_to_ptr.vmem [resolvable:$true] %s62_s12 }
   0xc   :  { %52 = dma.hbm_to_vmem [thread:$0]  %s45_s7, 2048, %s47_s11, [#allocation7], %s540_s26, %s540_s26, %s541_s27  }
   0xd   :  { %65 = dma.hbm_to_vmem [thread:$0]  %s61_s9, 128, %s63_s12, [#allocation10]  }
   0xe   :  { %531 = dma.done.wait [#allocation4], 1024  }
   0xf   :  { %532 = vsyncadd [#allocation4], 4294966272 }
  0x10   :  { %533 = dma.done.wait [#allocation7], 4096  }
  0x11   :  { %534 = vsyncadd [#allocation7], 4294963200 }
  0x12   :  { %535 = dma.done.wait [#allocation10], 128  }
  0x13   :  { %536 = vsyncadd [#allocation10], 4294967168  ;;  %v105_v0 = vld [vmem:[#allocation6 + $0x78] sm:$0xff]  ;;  %v104_v1 = vld [vmem:[#allocation6 + $0x70] sm:$0xff]  ;;  %s375_s16 = sshll.u32 %s769_s5, 4  ;;  %s376_s16 = int_to_ptr.hbm [resolvable:$true] %s375_s16 }
  0x14   :  { %v588_v2 = vld [vmem:[#allocation8 + $0x78] sm:$0xff]  ;;  %110 = vmatpush.msra.mxu0 %v105_v0  ;;  %v591_v3 = vld [vmem:[#allocation8 + $0x70] sm:$0xff]  ;;  %v103_v4 = vld [vmem:[#allocation6 + $0x68] sm:$0xff] }
  0x15   :  { %177 = vmatpush.msra.mxu1 %v588_v2  ;;  %v593_v5 = vld [vmem:[#allocation8 + $0x68] sm:$0xff]  ;;  %201 = vmatpush.msra.mxu2 %v588_v2  ;;  %v102_v6 = vld [vmem:[#allocation6 + $0x60] sm:$0xff]  ;;  %v101_v8 = vld [vmem:[#allocation6 + $0x58] sm:$0xff] }
  0x16   :  { %225 = vmatpush.msra.mxu3 %v588_v2  ;;  %111 = vmatpush.msra.mxu0 %v104_v1  ;;  %v598_v7 = vld [vmem:[#allocation8 + $0x60] sm:$0xff]  ;;  %v603_v9 = vld [vmem:[#allocation8 + $0x58] sm:$0xff]  ;;  %v100_v10 = vld [vmem:[#allocation6 + $0x50] sm:$0xff] }
  0x17   :  { %178 = vmatpush.msra.mxu1 %v591_v3  ;;  %202 = vmatpush.msra.mxu2 %v591_v3  ;;  %v608_v11 = vld [vmem:[#allocation8 + $0x50] sm:$0xff]  ;;  %v99_v12 = vld [vmem:[#allocation6 + $0x48] sm:$0xff]  ;;  %v98_v14 = vld [vmem:[#allocation6 + $0x40] sm:$0xff] }
  0x18   :  { %226 = vmatpush.msra.mxu3 %v591_v3  ;;  %112 = vmatpush.msra.mxu0 %v103_v4  ;;  %v613_v13 = vld [vmem:[#allocation8 + $0x48] sm:$0xff]  ;;  %v618_v15 = vld [vmem:[#allocation8 + $0x40] sm:$0xff]  ;;  %v97_v16 = vld [vmem:[#allocation6 + $0x38] sm:$0xff] }
  0x19   :  { %179 = vmatpush.msra.mxu1 %v593_v5  ;;  %203 = vmatpush.msra.mxu2 %v593_v5  ;;  %v623_v17 = vld [vmem:[#allocation8 + $0x38] sm:$0xff]  ;;  %v96_v18 = vld [vmem:[#allocation6 + $0x30] sm:$0xff]  ;;  %v95_v20 = vld [vmem:[#allocation6 + $0x28] sm:$0xff] }
  0x1a   :  { %227 = vmatpush.msra.mxu3 %v593_v5  ;;  %113 = vmatpush.msra.mxu0 %v102_v6  ;;  %v628_v19 = vld [vmem:[#allocation8 + $0x30] sm:$0xff]  ;;  %v633_v21 = vld [vmem:[#allocation8 + $0x28] sm:$0xff]  ;;  %v94_v22 = vld [vmem:[#allocation6 + $0x20] sm:$0xff] }
  0x1b   :  { %180 = vmatpush.msra.mxu1 %v598_v7  ;;  %204 = vmatpush.msra.mxu2 %v598_v7  ;;  %v638_v23 = vld [vmem:[#allocation8 + $0x20] sm:$0xff]  ;;  %v93_v24 = vld [vmem:[#allocation6 + $0x18] sm:$0xff]  ;;  %v92_v26 = vld [vmem:[#allocation6 + $0x10] sm:$0xff] }
  0x1c   :  { %228 = vmatpush.msra.mxu3 %v598_v7  ;;  %114 = vmatpush.msra.mxu0 %v101_v8  ;;  %v643_v25 = vld [vmem:[#allocation8 + $0x18] sm:$0xff]  ;;  %v648_v27 = vld [vmem:[#allocation8 + $0x10] sm:$0xff]  ;;  %v91_v28 = vld [vmem:[#allocation6 + $0x8] sm:$0xff] }
  0x1d   :  { %181 = vmatpush.msra.mxu1 %v603_v9  ;;  %205 = vmatpush.msra.mxu2 %v603_v9  ;;  %v653_v29 = vld [vmem:[#allocation8 + $0x8] sm:$0xff]  ;;  %v90_v30 = vld [vmem:[#allocation6] sm:$0xff]  ;;  %v84_v41 = vld [vmem:[#allocation3 + $0x10] sm:$0xff] }
  0x1e   :  { %229 = vmatpush.msra.mxu3 %v603_v9  ;;  %115 = vmatpush.msra.mxu0 %v100_v10  ;;  %v658_v31 = vld [vmem:[#allocation8] sm:$0xff]  ;;  %v83_v34 = vld [vmem:[#allocation3 + $0x8] sm:$0xff]  ;;  %v85_v47 = vld [vmem:[#allocation3 + $0x18] sm:$0xff] }
  0x1f   :  { %182 = vmatpush.msra.mxu1 %v608_v11  ;;  %206 = vmatpush.msra.mxu2 %v608_v11  ;;  %v82_v32 = vld [vmem:[#allocation3] sm:$0xff]  ;;  %v87_v59 = vld [vmem:[#allocation3 + $0x28] sm:$0xff]  ;;  %v88_v60 = vld [vmem:[#allocation3 + $0x30] sm:$0xff] }
  0x20   :  { %230 = vmatpush.msra.mxu3 %v608_v11  ;;  %116 = vmatpush.msra.mxu0 %v99_v12  ;;  %v175_v33 = vld [vmem:[#allocation9] sm:$0xff] }
  0x21   :  { %183 = vmatpush.msra.mxu1 %v613_v13  ;;  %207 = vmatpush.msra.mxu2 %v613_v13  ;;  %v751_v35 = vld [vmem:[%s767_s3] ss:$0 sm:$0xff]  ;;  %s545_s3 = smov [#allocation11]  }
  0x22   :  { %231 = vmatpush.msra.mxu3 %v613_v13  ;;  %117 = vmatpush.msra.mxu0 %v98_v14  ;;  %v86_v53 = vld [vmem:[#allocation3 + $0x20] sm:$0xff]  ;;  %s373_s13 = sshll.u32 %s545_s3, 4  ;;  %s374_s13 = int_to_ptr.vmem [resolvable:$true] %s373_s13 }
  0x23   :  { %184 = vmatpush.msra.mxu1 %v618_v15  ;;  %208 = vmatpush.msra.mxu2 %v618_v15 }
  0x24   :  { %232 = vmatpush.msra.mxu3 %v618_v15  ;;  %118 = vmatpush.msra.mxu0 %v97_v16 }
  0x25   :  { %185 = vmatpush.msra.mxu1 %v623_v17  ;;  %209 = vmatpush.msra.mxu2 %v623_v17 }
  0x26   :  { %233 = vmatpush.msra.mxu3 %v623_v17  ;;  %119 = vmatpush.msra.mxu0 %v96_v18 }
  0x27   :  { %186 = vmatpush.msra.mxu1 %v628_v19  ;;  %210 = vmatpush.msra.mxu2 %v628_v19 }
  0x28   :  { %234 = vmatpush.msra.mxu3 %v628_v19  ;;  %120 = vmatpush.msra.mxu0 %v95_v20 }
  0x29   :  { %187 = vmatpush.msra.mxu1 %v633_v21  ;;  %211 = vmatpush.msra.mxu2 %v633_v21 }
  0x2a   :  { %235 = vmatpush.msra.mxu3 %v633_v21  ;;  %121 = vmatpush.msra.mxu0 %v94_v22 }
  0x2b   :  { %188 = vmatpush.msra.mxu1 %v638_v23  ;;  %212 = vmatpush.msra.mxu2 %v638_v23 }
  0x2c   :  { %236 = vmatpush.msra.mxu3 %v638_v23  ;;  %122 = vmatpush.msra.mxu0 %v93_v24 }
  0x2d   :  { %189 = vmatpush.msra.mxu1 %v643_v25  ;;  %213 = vmatpush.msra.mxu2 %v643_v25 }
  0x2e   :  { %237 = vmatpush.msra.mxu3 %v643_v25  ;;  %123 = vmatpush.msra.mxu0 %v92_v26 }
  0x2f   :  { %190 = vmatpush.msra.mxu1 %v648_v27  ;;  %214 = vmatpush.msra.mxu2 %v648_v27 }
  0x30   :  { %238 = vmatpush.msra.mxu3 %v648_v27  ;;  %124 = vmatpush.msra.mxu0 %v91_v28 }
  0x31   :  { %191 = vmatpush.msra.mxu1 %v653_v29  ;;  %215 = vmatpush.msra.mxu2 %v653_v29 }
  0x32   :  { %239 = vmatpush.msra.mxu3 %v653_v29  ;;  %125 = vmatpush.msra.mxu0 %v90_v30 }
  0x33   :  { %192 = vmatpush.msra.mxu1 %v658_v31  ;;  %126 = vmatmul.f32.vlgmr.msra.gmra.mxu0 %v82_v32 }
  0x34   :  { %193 = vmatmul.f32.vlgmr.msra.gmra.mxu1 %v175_v33  ;;  %216 = vmatpush.msra.mxu2 %v658_v31 }
  0x35   :  { %240 = vmatpush.msra.mxu3 %v658_v31  ;;  %249 = vmatpush.msrb.mxu1 %v588_v2 }
  0x36   :  { %273 = vmatpush.msrb.mxu2 %v588_v2  ;;  %321 = vmatpush.msrb.mxu0 %v588_v2 }
  0x37   :  { %297 = vmatpush.msrb.mxu3 %v588_v2  ;;  %250 = vmatpush.msrb.mxu1 %v591_v3 }
  0x38   :  { %274 = vmatpush.msrb.mxu2 %v591_v3  ;;  %322 = vmatpush.msrb.mxu0 %v591_v3 }
  0x39   :  { %298 = vmatpush.msrb.mxu3 %v591_v3  ;;  %251 = vmatpush.msrb.mxu1 %v593_v5 }
  0x3a   :  { %275 = vmatpush.msrb.mxu2 %v593_v5  ;;  %323 = vmatpush.msrb.mxu0 %v593_v5 }
  0x3b   :  { %299 = vmatpush.msrb.mxu3 %v593_v5  ;;  %252 = vmatpush.msrb.mxu1 %v598_v7 }
  0x3c   :  { %276 = vmatpush.msrb.mxu2 %v598_v7  ;;  %324 = vmatpush.msrb.mxu0 %v598_v7 }
  0x3d   :  { %300 = vmatpush.msrb.mxu3 %v598_v7  ;;  %253 = vmatpush.msrb.mxu1 %v603_v9 }
  0x3e   :  { %277 = vmatpush.msrb.mxu2 %v603_v9  ;;  %325 = vmatpush.msrb.mxu0 %v603_v9 }
  0x3f   :  { %301 = vmatpush.msrb.mxu3 %v603_v9  ;;  %254 = vmatpush.msrb.mxu1 %v608_v11 }
  0x40   :  { %278 = vmatpush.msrb.mxu2 %v608_v11  ;;  %326 = vmatpush.msrb.mxu0 %v608_v11 }
  0x41   :  { %302 = vmatpush.msrb.mxu3 %v608_v11  ;;  %255 = vmatpush.msrb.mxu1 %v613_v13 }
  0x42   :  { %279 = vmatpush.msrb.mxu2 %v613_v13  ;;  %327 = vmatpush.msrb.mxu0 %v613_v13 }
  0x43   :  { %303 = vmatpush.msrb.mxu3 %v613_v13  ;;  %256 = vmatpush.msrb.mxu1 %v618_v15 }
  0x44   :  { %280 = vmatpush.msrb.mxu2 %v618_v15  ;;  %328 = vmatpush.msrb.mxu0 %v618_v15 }
  0x45   :  { %304 = vmatpush.msrb.mxu3 %v618_v15  ;;  %257 = vmatpush.msrb.mxu1 %v623_v17 }
  0x46   :  { %281 = vmatpush.msrb.mxu2 %v623_v17  ;;  %329 = vmatpush.msrb.mxu0 %v623_v17 }
  0x47   :  { %305 = vmatpush.msrb.mxu3 %v623_v17  ;;  %258 = vmatpush.msrb.mxu1 %v628_v19 }
  0x48   :  { %282 = vmatpush.msrb.mxu2 %v628_v19  ;;  %330 = vmatpush.msrb.mxu0 %v628_v19 }
  0x49   :  { %306 = vmatpush.msrb.mxu3 %v628_v19  ;;  %259 = vmatpush.msrb.mxu1 %v633_v21 }
  0x4a   :  { %283 = vmatpush.msrb.mxu2 %v633_v21  ;;  %331 = vmatpush.msrb.mxu0 %v633_v21 }
  0x4b   :  { %307 = vmatpush.msrb.mxu3 %v633_v21  ;;  %260 = vmatpush.msrb.mxu1 %v638_v23 }
  0x4c   :  { %284 = vmatpush.msrb.mxu2 %v638_v23  ;;  %332 = vmatpush.msrb.mxu0 %v638_v23 }
  0x4d   :  { %308 = vmatpush.msrb.mxu3 %v638_v23  ;;  %261 = vmatpush.msrb.mxu1 %v643_v25 }
  0x4e   :  { %285 = vmatpush.msrb.mxu2 %v643_v25  ;;  %333 = vmatpush.msrb.mxu0 %v643_v25 }
  0x4f   :  { %309 = vmatpush.msrb.mxu3 %v643_v25  ;;  %262 = vmatpush.msrb.mxu1 %v648_v27 }
  0x50   :  { %286 = vmatpush.msrb.mxu2 %v648_v27  ;;  %334 = vmatpush.msrb.mxu0 %v648_v27 }
  0x51   :  { %310 = vmatpush.msrb.mxu3 %v648_v27  ;;  %263 = vmatpush.msrb.mxu1 %v653_v29 }
  0x52   :  { %287 = vmatpush.msrb.mxu2 %v653_v29  ;;  %335 = vmatpush.msrb.mxu0 %v653_v29 }
  0x53   :  { %311 = vmatpush.msrb.mxu3 %v653_v29  ;;  %264 = vmatpush.msrb.mxu1 %v658_v31 }
  0x54   :  { %288 = vmatpush.msrb.mxu2 %v658_v31  ;;  %336 = vmatpush.msrb.mxu0 %v658_v31 }
  0x55   :  { %312 = vmatpush.msrb.mxu3 %v658_v31  ;;  %345 = vmatpush.msra.mxu1 %v588_v2  ;;  %v89_v2 = vld [vmem:[#allocation3 + $0x38] sm:$0xff] }
  0x56   :  { %129 = vmatmul.f32.gmra.mxu0 %v83_v34 }
  0x57   :  { %346 = vmatpush.msra.mxu1 %v591_v3 }
  0x59   :  { %347 = vmatpush.msra.mxu1 %v593_v5 }
  0x5b   :  { %348 = vmatpush.msra.mxu1 %v598_v7 }
  0x5d   :  { %349 = vmatpush.msra.mxu1 %v603_v9 }
  0x5e   :  { %132 = vmatmul.f32.gmra.mxu0 %v84_v41 }
  0x5f   :  { %350 = vmatpush.msra.mxu1 %v608_v11 }
  0x61   :  { %351 = vmatpush.msra.mxu1 %v613_v13 }
  0x63   :  { %352 = vmatpush.msra.mxu1 %v618_v15 }
  0x65   :  { %353 = vmatpush.msra.mxu1 %v623_v17 }
  0x66   :  { %135 = vmatmul.f32.gmra.mxu0 %v85_v47 }
  0x67   :  { %354 = vmatpush.msra.mxu1 %v628_v19 }
  0x69   :  { %355 = vmatpush.msra.mxu1 %v633_v21 }
  0x6b   :  { %356 = vmatpush.msra.mxu1 %v638_v23 }
  0x6d   :  { %357 = vmatpush.msra.mxu1 %v643_v25 }
  0x6e   :  { %138 = vmatmul.f32.gmra.mxu0 %v86_v53 }
  0x6f   :  { %358 = vmatpush.msra.mxu1 %v648_v27 }
  0x71   :  { %359 = vmatpush.msra.mxu1 %v653_v29 }
  0x73   :  { %360 = vmatpush.msra.mxu1 %v658_v31 }
  0x76   :  { %141 = vmatmul.f32.gmra.mxu0 %v87_v59 }
  0x7e   :  { %144 = vmatmul.f32.gmra.mxu0 %v88_v60 }
  0x86   :  { %147 = vmatmul.f32.gmra.mxu0 %v89_v2 }
  0xb0   :  { %v127_v36 = vpop.f32.mrf.mxu0 }
  0xb1   :  { %v194_v37 = vpop.f32.mrf.mxu1  ;;  %v128_v38 = vadd.f32 %v751_v35, %v127_v36 }
  0xb3   :  { %v197_v39 = vadd.f32 %v194_v37, %v128_v38 }
  0xb5   :  { %395 = vtanh.f32 %v197_v39 }
  0xbb   :  { %v396_v40 = vpop.eup %395 }
  0xbc   :  { %217 = vmatmul.f32.vlgmr.msra.gmra.mxu2 %v396_v40 }
  0xd3   :  { %v130_v42 = vpop.f32.mrf.mxu0 }
  0xd4   :  { %v131_v43 = vadd.f32 %v751_v35, %v130_v42 }
  0xdb   :  { %v133_v48 = vpop.f32.mrf.mxu0 }
  0xdc   :  { %v134_v49 = vadd.f32 %v751_v35, %v133_v48 }
  0xe3   :  { %v136_v54 = vpop.f32.mrf.mxu0 }
  0xe4   :  { %v137_v55 = vadd.f32 %v751_v35, %v136_v54 }
  0xeb   :  { %v139_v61 = vpop.f32.mrf.mxu0 }
  0xec   :  { %v140_v62 = vadd.f32 %v751_v35, %v139_v61 }
  0xf3   :  { %v142_v3 = vpop.f32.mrf.mxu0 }
  0xf4   :  { %v143_v4 = vadd.f32 %v751_v35, %v142_v3 }
  0xfb   :  { %v145_v8 = vpop.f32.mrf.mxu0 }
  0xfc   :  { %v146_v10 = vadd.f32 %v751_v35, %v145_v8 }
 0x103   :  { %v148_v9 = vpop.f32.mrf.mxu0 }
 0x104   :  { %v149_v14 = vadd.f32 %v751_v35, %v148_v9 }
 0x13f   :  { %v218_v44 = vpop.f32.mrf.mxu2 }
 0x140   :  { %v221_v45 = vadd.f32 %v218_v44, %v131_v43 }
 0x142   :  { %397 = vtanh.f32 %v221_v45 }
 0x148   :  { %v398_v46 = vpop.eup %397 }
 0x149   :  { %241 = vmatmul.f32.vlgmr.msra.gmra.mxu3 %v398_v46 }
 0x1cc   :  { %v242_v50 = vpop.f32.mrf.mxu3 }
 0x1cd   :  { %v245_v51 = vadd.f32 %v242_v50, %v134_v49 }
 0x1cf   :  { %399 = vtanh.f32 %v245_v51 }
 0x1d5   :  { %v400_v52 = vpop.eup %399 }
 0x1d6   :  { %265 = vmatmul.f32.vlgmr.msrb.gmra.mxu1 %v400_v52 }
 0x253   :  { %v266_v56 = vpop.f32.mrf.mxu1 }
 0x254   :  { %v269_v57 = vadd.f32 %v266_v56, %v137_v55 }
 0x256   :  { %401 = vtanh.f32 %v269_v57 }
 0x25c   :  { %v402_v58 = vpop.eup %401 }
 0x25d   :  { %289 = vmatmul.f32.vlgmr.msrb.gmra.mxu2 %v402_v58 }
 0x2e0   :  { %v290_v63 = vpop.f32.mrf.mxu2 }
 0x2e1   :  { %v293_v0 = vadd.f32 %v290_v63, %v140_v62 }
 0x2e3   :  { %403 = vtanh.f32 %v293_v0 }
 0x2e9   :  { %v404_v1 = vpop.eup %403 }
 0x2ea   :  { %313 = vmatmul.f32.vlgmr.msrb.gmra.mxu3 %v404_v1 }
 0x36d   :  { %v314_v5 = vpop.f32.mrf.mxu3 }
 0x36e   :  { %v317_v6 = vadd.f32 %v314_v5, %v143_v4 }
 0x370   :  { %405 = vtanh.f32 %v317_v6 }
 0x376   :  { %v406_v7 = vpop.eup %405 }
 0x377   :  { %337 = vmatmul.f32.vlgmr.msrb.gmra.mxu0 %v406_v7 }
 0x3f4   :  { %v338_v11 = vpop.f32.mrf.mxu0 }
 0x3f5   :  { %v341_v12 = vadd.f32 %v338_v11, %v146_v10 }
 0x3f7   :  { %407 = vtanh.f32 %v341_v12 }
 0x3fd   :  { %v408_v13 = vpop.eup %407 }
 0x3fe   :  { %361 = vmatmul.f32.vlgmr.msra.gmra.mxu1 %v408_v13 }
 0x47b   :  { %v362_v15 = vpop.f32.mrf.mxu1 }
 0x47c   :  { %v365_v16 = vadd.f32 %v362_v15, %v149_v14 }
 0x47e   :  { %409 = vtanh.f32 %v365_v16 }
 0x484   :  { %v410_v17 = vpop.eup %409 }
 0x485   :  { %367 = vst [vmem:[#allocation11] sm:$0xff] %v410_v17 }
 0x486   :  { %378 = dma.vmem_to_hbm [thread:$0]  %s374_s13, 128, %s376_s16, [#allocation5]  }
 0x487   :  { %537 = dma.done.wait [#allocation5], 128  }
 0x488   :  { %538 = vsyncadd [#allocation5], 4294967168 }
 0x489   :  { %383 = vsyncpa [#allocation4], 1 }
 0x48a   :  { %384 = vsyncpa [#allocation7], 1 }
 0x48b   :  { %385 = vsyncpa [#allocation10], 1 }
 0x48c   :  { %386 = vsyncpa [#allocation5], 1 }

</bundles_post_ra>
